<compile_context>
chip_gen: v5e
topology: v5e:2x2
jax: 0.10.0
libtpu: 0.0.40
codegen_flags: <defaults>
</compile_context>

<pallas_src>
import functools

import jax
import jax.numpy as jnp
from jax.experimental import pallas as pl
from jax.experimental.pallas import tpu as pltpu


def _round_up(x, m):
    return (x + m - 1) // m * m


def _vmem_budget_bytes():
    """Per-generation scoped-VMEM budget (~80% of physical capacity):
    ~102 MiB on v5e/v6e (128 MiB physical), ~51 MiB on v7x (64 MiB)."""
    try:
        info = pltpu.get_tpu_info()
        cap = int(getattr(info, "vmem_capacity_bytes", 0)) or (64 << 20)
    except Exception:
        cap = 64 << 20
    return int(cap * 0.8)


def _cheb_kernel(feat_ref, lhat_ref, w0_ref, wk_ref, b_ref, out_ref, xab_ref,
                 *, tm, lhat_resident):
    """Grid = (K-1, dst_row_tiles); the order axis is OUTER so the full
    previous-order basis is complete before any row tile of the next order
    consumes it.  The output block is resident (constant index_map): it is
    accumulated in VMEM and written back to HBM exactly once."""
    kk = pl.program_id(0) + 1                 # Chebyshev order produced this step
    i = pl.program_id(1)
    r0 = pl.multiple_of(i * tm, tm)
    rows = pl.ds(r0, tm)

    # bf16 rescaled-Laplacian rows for this dst tile: (tm, N_pad).
    lhat = lhat_ref[rows, :] if lhat_resident else lhat_ref[...]

    @pl.when(kk == 1)
    def _():
        # Orders 0 and 1 fused into the first pass over L_hat; bias added once.
        t0 = feat_ref[rows, :]                                       # f32
        t1 = jnp.dot(lhat, feat_ref[...].astype(jnp.bfloat16),       # bf16 MXU
                     preferred_element_type=jnp.float32)
        xab_ref[0, rows, :] = t0.astype(jnp.bfloat16)                # slot 0 <- T_0
        xab_ref[1, rows, :] = t1.astype(jnp.bfloat16)                # slot 1 <- T_1
        out_ref[rows, :] = (
            b_ref[...]
            + jnp.dot(t0, w0_ref[...], preferred_element_type=jnp.float32)
            + jnp.dot(t1, wk_ref[...], preferred_element_type=jnp.float32))

    @pl.when(kk >= 2)
    def _():
        # T_k = 2 * L_hat @ T_{k-1} - T_{k-2}; single slot-indexed body.
        src = (kk - 1) % 2                    # slot holding T_{k-1} (all rows)
        dst = kk % 2                          # slot holding T_{k-2}; receives T_k
        prev = xab_ref[src]                   # bf16, full (N_pad, Din)
        h = jnp.dot(lhat, prev, preferred_element_type=jnp.float32)
        t_k = 2.0 * h - xab_ref[dst, rows, :].astype(jnp.float32)
        xab_ref[dst, rows, :] = t_k.astype(jnp.bfloat16)   # T_{k-2}[rows] is dead here
        out_ref[rows, :] = out_ref[rows, :] + jnp.dot(
            t_k, wk_ref[...], preferred_element_type=jnp.float32)


def _cheb_k1_kernel(feat_ref, w0_ref, b_ref, out_ref):
    """K == 1: out = feat @ W_0 + bias.  No Laplacian is read at all."""
    out_ref[...] = (jnp.dot(feat_ref[...], w0_ref[...],
                            preferred_element_type=jnp.float32) + b_ref[...])


def cheb_conv(adj, feat, norm, lam, w, bias, *, tm_target=256):
    """ChebConv forward. adj: (N,N) dense dst x src, feat: (N,Din),
    norm/lam: (N,1), w: (K,Din,Dout), bias: (1,Dout) or (Dout,) -> (N,Dout)."""
    n, din = feat.shape
    k, _, dout = w.shape
    lane = 128

    # ---- tiling ------------------------------------------------------------
    if n >= tm_target:
        tm = tm_target
        n_pad = _round_up(n, tm)
    else:
        n_pad = _round_up(n, 8)
        tm = n_pad
    num_tiles = n_pad // tm
    dout_pad = _round_up(dout, 128)            # lane-dense output (unmasked vst)

    budget = _vmem_budget_bytes()

    # ---- operands: fold / pad / cast once in the wrapper ---------------------
    # L_hat = diag(2/lam) @ (I - diag(norm) A diag(norm)) - I, built directly in
    # padded bf16 form: off-diagonal -(2/lam)*A_norm, diagonal (2/lam - 1).
    # Padded rows/cols stay exactly zero so padded nodes remain 0 through the
    # recurrence.
    nf = norm.astype(jnp.float32)
    scale = 2.0 / lam.astype(jnp.float32)                      # (N, 1)
    a_norm = nf * adj.astype(jnp.float32) * nf.reshape(1, n)
    diag = jnp.arange(n)
    l_core = ((-scale) * a_norm).at[diag, diag].add(scale[:, 0] - 1.0)
    l_hat_p = (jnp.zeros((n_pad, n_pad), jnp.bfloat16)
               .at[:n, :n].set(l_core.astype(jnp.bfloat16)))

    feat_p = jnp.zeros((n_pad, din), jnp.float32).at[:n, :].set(feat.astype(jnp.float32))
    w_p = jnp.zeros((k, din, dout_pad), jnp.float32).at[:, :, :dout].set(w.astype(jnp.float32))
    b_p = jnp.zeros((1, dout_pad), jnp.float32).at[:, :dout].set(
        jnp.reshape(bias, (1, dout)).astype(jnp.float32))
    w0_p = w_p[0]                                              # (Din, Dout_pad)

    # ---- K == 1: skip the Laplacian entirely --------------------------------
    if k == 1:
        out_p = pl.pallas_call(
            _cheb_k1_kernel,
            out_shape=jax.ShapeDtypeStruct((n_pad, dout_pad), jnp.float32),
            grid=(num_tiles,),
            in_specs=[
                pl.BlockSpec((tm, din), lambda i: (i, 0)),
                pl.BlockSpec((din, dout_pad), lambda i: (0, 0)),
                pl.BlockSpec((1, dout_pad), lambda i: (0, 0)),
            ],
            out_specs=pl.BlockSpec((tm, dout_pad), lambda i: (i, 0)),
            compiler_params=pltpu.CompilerParams(
                dimension_semantics=("parallel",),
                vmem_limit_bytes=int(min(64 << 20, budget))),
        )(feat_p, w0_p, b_p)
        return out_p[:n, :dout].astype(feat.dtype)

    wrest_p = w_p[1:]                                          # (K-1, Din, Dout_pad)

    # ---- VMEM sizing: prefer a fully resident bf16 L_hat ---------------------
    din_l = _round_up(din, lane)
    din_s = _round_up(din, 8)
    fixed = (
        2 * n_pad * din_l * 4            # feat (2 buffers)
        + 2 * n_pad * dout_pad * 4       # resident output block (counted 2x, conservative)
        + 2 * n_pad * din_l * 2          # 2-slot bf16 basis scratch
        + 2 * din_s * dout_pad * 4       # W_0
        + 2 * din_s * dout_pad * 4       # per-order W block
        + 2 * 8 * dout_pad * 4           # bias
        + (4 << 20)                      # Mosaic internal scratch headroom
    )
    est_resident = fixed + 2 * n_pad * n_pad * 2               # full bf16 L_hat
    lhat_resident = est_resident <= budget
    if lhat_resident:
        est = est_resident
        lhat_spec = pl.BlockSpec((n_pad, n_pad), lambda kk, i: (0, 0))
    else:
        # Stream (tm, N_pad) dst-row tiles of L_hat; shrink tm if needed to fit.
        while (fixed + 2 * tm * n_pad * 2 > budget and tm > 128
               and tm % 2 == 0 and n_pad % (tm // 2) == 0):
            tm //= 2
        num_tiles = n_pad // tm
        est = fixed + 2 * tm * n_pad * 2
        lhat_spec = pl.BlockSpec((tm, n_pad), lambda kk, i: (i, 0))
    # TODO(synk): for very large N on v7x (64 MiB VMEM) the O(N) feat / basis /
    # output residency must be demoted to HBM-backed streaming; not done here.
    vmem_limit = int(min(max(est, 32 << 20), budget))

    # TODO(synk): v7x megacore split of the dst-row axis (core_map +
    # VMEM_SHARED bases + core_barrier between orders) once L_hat is resident
    # and the kernel is compute-bound; both axes stay "arbitrary" here because
    # every row tile of order k reads the full previous-order basis.
    grid = (k - 1, num_tiles)
    out_p = pl.pallas_call(
        functools.partial(_cheb_kernel, tm=tm, lhat_resident=lhat_resident),
        out_shape=jax.ShapeDtypeStruct((n_pad, dout_pad), jnp.float32),
        grid=grid,
        in_specs=[
            pl.BlockSpec((n_pad, din), lambda kk, i: (0, 0)),               # feat (resident)
            lhat_spec,                                                      # L_hat (bf16)
            pl.BlockSpec((din, dout_pad), lambda kk, i: (0, 0)),            # W_0 (resident)
            pl.BlockSpec((None, din, dout_pad), lambda kk, i: (kk, 0, 0)),  # W_{kk}
            pl.BlockSpec((1, dout_pad), lambda kk, i: (0, 0)),              # bias
        ],
        # Single resident output block: accumulated in VMEM across all orders,
        # written back to HBM exactly once at the end of the grid.
        out_specs=pl.BlockSpec((n_pad, dout_pad), lambda kk, i: (0, 0)),
        scratch_shapes=[
            pltpu.VMEM((2, n_pad, din), jnp.bfloat16),   # T_{k-1}/T_{k-2} slots
        ],
        compiler_params=pltpu.CompilerParams(
            dimension_semantics=("arbitrary", "arbitrary"),
            vmem_limit_bytes=vmem_limit),
    )(feat_p, l_hat_p, w0_p, wrest_p, b_p)

    return out_p[:n, :dout].astype(feat.dtype)


def cheb_conv_ref(adj, feat, norm, lam, w, bias):
    """Plain-JAX f32 reference mirroring the PyTorch/DGL forward."""
    k = w.shape[0]
    x0 = feat
    rst = x0 @ w[0]
    if k > 1:
        h = (adj @ (x0 * norm)) * norm
        x1 = -2.0 * h / lam + x0 * (2.0 / lam - 1.0)
        rst = rst + x1 @ w[1]
        for i in range(2, k):
            h = (adj @ (x1 * norm)) * norm
            x2 = -4.0 * h / lam + x1 * (4.0 / lam - 2.0) - x0
            rst = rst + x2 @ w[i]
            x1, x0 = x2, x1
    return rst + jnp.reshape(bias, (1, -1))


if __name__ == "__main__":
    N, DIN, DOUT, K = 64, 32, 16, 3

    key = jax.random.PRNGKey(0)
    k_adj, k_feat, k_w = jax.random.split(key, 3)

    # Deterministic random directed graph as dense adjacency (dst x src).
    adj = (jax.random.uniform(k_adj, (N, N)) < 0.1).astype(jnp.float32)

    feat = jax.random.normal(k_feat, (N, DIN), dtype=jnp.float32)

    # norm = in_degree.clamp(min=1) ** -0.5   (in_degree[i] = sum_j adj[i, j])
    in_deg = jnp.clip(adj.sum(axis=1), 1.0, None)
    norm = (in_deg ** -0.5).reshape(N, 1).astype(jnp.float32)

    # TODO(synk): dgl.laplacian_lambda_max (sparse eigen-solve) has no Pallas
    # equivalent; use the common lambda_max = 2.0 assumption per node.
    lam = jnp.full((N, 1), 2.0, dtype=jnp.float32)

    # K Linear layers (bias=False), xavier_normal_ with gain for 'relu' (sqrt(2)).
    # PyTorch weight is (Dout, Din), applied as x @ W^T -> store as (K, Din, Dout).
    gain = jnp.sqrt(2.0)
    std = gain * jnp.sqrt(2.0 / (DIN + DOUT))
    w = jax.random.normal(k_w, (K, DIN, DOUT), dtype=jnp.float32) * std

    # Module bias is zero-initialized.
    bias = jnp.zeros((1, DOUT), dtype=jnp.float32)

    cheb = jax.jit(cheb_conv)
    out = jax.block_until_ready(cheb(adj, feat, norm, lam, w, bias))
    ref = cheb_conv_ref(adj, feat, norm, lam, w, bias)

    assert out.shape == (N, DOUT)
    # The kernel folds norm/lambda into a *bf16* L_hat and feeds bf16 bases to
    # the MXU (f32 accumulation); that quantization compounds through the
    # K-order recurrence, so the tolerance vs. the exact f32 reference is
    # loose — but still orders of magnitude below the O(1) error that a wrong
    # recurrence constant (e.g. missing 2x or -T_{k-2}) would produce.
    assert jnp.allclose(out, ref, atol=1e-1, rtol=1e-1), float(jnp.max(jnp.abs(out - ref)))

    # Exercise the dedicated K == 1 path (pure f32, no L_hat input at all).
    out1 = jax.block_until_ready(jax.jit(cheb_conv)(adj, feat, norm, lam, w[:1], bias))
    ref1 = cheb_conv_ref(adj, feat, norm, lam, w[:1], bias)
    assert out1.shape == (N, DOUT)
    assert jnp.allclose(out1, ref1, atol=2e-2, rtol=2e-2), float(jnp.max(jnp.abs(out1 - ref1)))

    print("KERNEL_OK")
</pallas_src>

<mosaic_0001>
module attributes {stable_mosaic.version = 11 : i64} {
  func.func @_cheb_kernel(%arg0: i32, %arg1: i32, %arg2: memref<64x32xf32, #tpu.memory_space<vmem>>, %arg3: memref<64x64xbf16, #tpu.memory_space<vmem>>, %arg4: memref<32x128xf32, #tpu.memory_space<vmem>>, %arg5: memref<1x32x128xf32, #tpu.memory_space<vmem>>, %arg6: memref<1x128xf32, #tpu.memory_space<vmem>>, %arg7: memref<64x128xf32, #tpu.memory_space<vmem>>, %arg8: memref<2x64x32xbf16, #tpu.memory_space<vmem>>) attributes {dimension_semantics = [#tpu.dimension_semantics<arbitrary>, #tpu.dimension_semantics<arbitrary>], iteration_bounds = array<i64: 2, 1>, scalar_prefetch = 0 : i64, scratch_operands = 1 : i64, tpu.core_type = #tpu.core_type<tc>, window_params = [{pipeline_mode = #tpu.pipeline_mode<synchronous>, transform_indices = @transform_0, window_bounds = array<i64: 64, 32>}, {pipeline_mode = #tpu.pipeline_mode<synchronous>, transform_indices = @transform_1, window_bounds = array<i64: 64, 64>}, {pipeline_mode = #tpu.pipeline_mode<synchronous>, transform_indices = @transform_2, window_bounds = array<i64: 32, 128>}, {transform_indices = @transform_3, window_bounds = array<i64: 1, 32, 128>}, {pipeline_mode = #tpu.pipeline_mode<synchronous>, transform_indices = @transform_4, window_bounds = array<i64: 1, 128>}, {pipeline_mode = #tpu.pipeline_mode<synchronous>, transform_indices = @transform_5, window_bounds = array<i64: 64, 128>}]} {
    %c1_i32 = arith.constant 1 : i32
    %0 = arith.addi %arg0, %c1_i32 : i32
    %c64_i32 = arith.constant 64 : i32
    %1 = arith.muli %arg1, %c64_i32 : i32
    %2 = tpu.assume_multiple %1, 64 : i32
    %3 = arith.index_cast %2 : i32 to index
    %c0 = arith.constant 0 : index
    %4 = vector.load %arg3[%3, %c0] : memref<64x64xbf16, #tpu.memory_space<vmem>>, vector<64x64xbf16>
    %c1_i32_0 = arith.constant 1 : i32
    %5 = arith.cmpi eq, %0, %c1_i32_0 : i32
    %6 = arith.extui %5 : i1 to i32
    %c0_i32 = arith.constant 0 : i32
    %7 = arith.cmpi ne, %6, %c0_i32 : i32
    scf.if %7 {
      %11 = arith.index_cast %2 : i32 to index
      %c0_2 = arith.constant 0 : index
      %12 = vector.load %arg2[%11, %c0_2] : memref<64x32xf32, #tpu.memory_space<vmem>>, vector<64x32xf32>
      %c0_3 = arith.constant 0 : index
      %c0_4 = arith.constant 0 : index
      %13 = vector.load %arg2[%c0_3, %c0_4] : memref<64x32xf32, #tpu.memory_space<vmem>>, vector<64x32xf32>
      %14 = arith.truncf %13 : vector<64x32xf32> to vector<64x32xbf16>
      %cst = arith.constant dense<0.000000e+00> : vector<64x32xf32>
      %15 = tpu.matmul %4, %14, %cst {dimension_numbers = #tpu.dot_dimension_numbers<[1], [0], [0], [1], [0, 0, 1, 1], [], []>} : vector<64x64xbf16>, vector<64x32xbf16>, vector<64x32xf32> -> vector<64x32xf32>
      %16 = arith.truncf %12 : vector<64x32xf32> to vector<64x32xbf16>
      %c0_5 = arith.constant 0 : index
      %17 = arith.index_cast %2 : i32 to index
      %c0_6 = arith.constant 0 : index
      %18 = vector.load %arg8[%c0_5, %17, %c0_6] : memref<2x64x32xbf16, #tpu.memory_space<vmem>>, vector<1x64x32xbf16>
      %19 = vector.shape_cast %18 : vector<1x64x32xbf16> to vector<64x32xbf16>
      %20 = vector.shape_cast %16 : vector<64x32xbf16> to vector<1x64x32xbf16>
      tpu.vector_store %arg8[%c0_5, %17, %c0_6], %20 {strides = array<i32>} : memref<2x64x32xbf16, #tpu.memory_space<vmem>>, vector<1x64x32xbf16>,
      %21 = arith.truncf %15 : vector<64x32xf32> to vector<64x32xbf16>
      %c1 = arith.constant 1 : index
      %22 = arith.index_cast %2 : i32 to index
      %c0_7 = arith.constant 0 : index
      %23 = vector.load %arg8[%c1, %22, %c0_7] : memref<2x64x32xbf16, #tpu.memory_space<vmem>>, vector<1x64x32xbf16>
      %24 = vector.shape_cast %23 : vector<1x64x32xbf16> to vector<64x32xbf16>
      %25 = vector.shape_cast %21 : vector<64x32xbf16> to vector<1x64x32xbf16>
      tpu.vector_store %arg8[%c1, %22, %c0_7], %25 {strides = array<i32>} : memref<2x64x32xbf16, #tpu.memory_space<vmem>>, vector<1x64x32xbf16>,
      %c0_8 = arith.constant 0 : index
      %c0_9 = arith.constant 0 : index
      %26 = vector.load %arg6[%c0_8, %c0_9] : memref<1x128xf32, #tpu.memory_space<vmem>>, vector<1x128xf32>
      %c0_10 = arith.constant 0 : index
      %c0_11 = arith.constant 0 : index
      %27 = vector.load %arg4[%c0_10, %c0_11] : memref<32x128xf32, #tpu.memory_space<vmem>>, vector<32x128xf32>
      %cst_12 = arith.constant dense<0.000000e+00> : vector<64x128xf32>
      %28 = tpu.matmul %12, %27, %cst_12 {dimension_numbers = #tpu.dot_dimension_numbers<[1], [0], [0], [1], [0, 0, 1, 1], [], []>} : vector<64x32xf32>, vector<32x128xf32>, vector<64x128xf32> -> vector<64x128xf32>
      %29 = vector.broadcast %26 : vector<1x128xf32> to vector<64x128xf32>
      %30 = arith.addf %29, %28 : vector<64x128xf32>
      %c0_13 = arith.constant 0 : index
      %c0_14 = arith.constant 0 : index
      %c0_15 = arith.constant 0 : index
      %31 = vector.load %arg5[%c0_13, %c0_14, %c0_15] : memref<1x32x128xf32, #tpu.memory_space<vmem>>, vector<1x32x128xf32>
      %32 = vector.shape_cast %31 : vector<1x32x128xf32> to vector<32x128xf32>
      %cst_16 = arith.constant dense<0.000000e+00> : vector<64x128xf32>
      %33 = tpu.matmul %15, %32, %cst_16 {dimension_numbers = #tpu.dot_dimension_numbers<[1], [0], [0], [1], [0, 0, 1, 1], [], []>} : vector<64x32xf32>, vector<32x128xf32>, vector<64x128xf32> -> vector<64x128xf32>
      %34 = arith.addf %30, %33 : vector<64x128xf32>
      %35 = arith.index_cast %2 : i32 to index
      %c0_17 = arith.constant 0 : index
      %36 = vector.load %arg7[%35, %c0_17] : memref<64x128xf32, #tpu.memory_space<vmem>>, vector<64x128xf32>
      tpu.vector_store %arg7[%35, %c0_17], %34 {strides = array<i32>} : memref<64x128xf32, #tpu.memory_space<vmem>>, vector<64x128xf32>,
    } else {
    }
    %c2_i32 = arith.constant 2 : i32
    %8 = arith.cmpi sge, %0, %c2_i32 : i32
    %9 = arith.extui %8 : i1 to i32
    %c0_i32_1 = arith.constant 0 : i32
    %10 = arith.cmpi ne, %9, %c0_i32_1 : i32
    scf.if %10 {
      %c1_i32_2 = arith.constant 1 : i32
      %11 = arith.subi %0, %c1_i32_2 : i32
      %c2_i32_3 = arith.constant 2 : i32
      %c0_i32_4 = arith.constant 0 : i32
      %12 = arith.cmpi eq, %c2_i32_3, %c0_i32_4 : i32
      %c1_i32_5 = arith.constant 1 : i32
      %13 = arith.select %12, %c1_i32_5, %c2_i32_3 : i32
      %14 = arith.remsi %11, %13 : i32
      %c0_i32_6 = arith.constant 0 : i32
      %15 = arith.cmpi ne, %14, %c0_i32_6 : i32
      %c0_i32_7 = arith.constant 0 : i32
      %16 = arith.cmpi slt, %14, %c0_i32_7 : i32
      %c0_i32_8 = arith.constant 0 : i32
      %17 = arith.cmpi slt, %13, %c0_i32_8 : i32
      %18 = arith.xori %16, %17 : i1
      %19 = arith.andi %18, %15 : i1
      %20 = arith.addi %14, %13 : i32
      %21 = arith.select %19, %20, %14 : i32
      %c2_i32_9 = arith.constant 2 : i32
      %c0_i32_10 = arith.constant 0 : i32
      %22 = arith.cmpi eq, %c2_i32_9, %c0_i32_10 : i32
      %c1_i32_11 = arith.constant 1 : i32
      %23 = arith.select %22, %c1_i32_11, %c2_i32_9 : i32
      %24 = arith.remsi %0, %23 : i32
      %c0_i32_12 = arith.constant 0 : i32
      %25 = arith.cmpi ne, %24, %c0_i32_12 : i32
      %c0_i32_13 = arith.constant 0 : i32
      %26 = arith.cmpi slt, %24, %c0_i32_13 : i32
      %c0_i32_14 = arith.constant 0 : i32
      %27 = arith.cmpi slt, %23, %c0_i32_14 : i32
      %28 = arith.xori %26, %27 : i1
      %29 = arith.andi %28, %25 : i1
      %30 = arith.addi %24, %23 : i32
      %31 = arith.select %29, %30, %24 : i32
      %32 = arith.index_cast %21 : i32 to index
      %c0_15 = arith.constant 0 : index
      %c0_16 = arith.constant 0 : index
      %33 = vector.load %arg8[%32, %c0_15, %c0_16] : memref<2x64x32xbf16, #tpu.memory_space<vmem>>, vector<1x64x32xbf16>
      %34 = vector.shape_cast %33 : vector<1x64x32xbf16> to vector<64x32xbf16>
      %cst = arith.constant dense<0.000000e+00> : vector<64x32xf32>
      %35 = tpu.matmul %4, %34, %cst {dimension_numbers = #tpu.dot_dimension_numbers<[1], [0], [0], [1], [0, 0, 1, 1], [], []>} : vector<64x64xbf16>, vector<64x32xbf16>, vector<64x32xf32> -> vector<64x32xf32>
      %cst_17 = arith.constant 2.000000e+00 : f32
      %36 = vector.broadcast %cst_17 : f32 to vector<64x32xf32>
      %37 = arith.mulf %36, %35 : vector<64x32xf32>
      %38 = arith.index_cast %31 : i32 to index
      %39 = arith.index_cast %2 : i32 to index
      %c0_18 = arith.constant 0 : index
      %40 = vector.load %arg8[%38, %39, %c0_18] : memref<2x64x32xbf16, #tpu.memory_space<vmem>>, vector<1x64x32xbf16>
      %41 = vector.shape_cast %40 : vector<1x64x32xbf16> to vector<64x32xbf16>
      %42 = arith.extf %41 : vector<64x32xbf16> to vector<64x32xf32>
      %43 = arith.subf %37, %42 : vector<64x32xf32>
      %44 = arith.truncf %43 : vector<64x32xf32> to vector<64x32xbf16>
      %45 = arith.index_cast %31 : i32 to index
      %46 = arith.index_cast %2 : i32 to index
      %c0_19 = arith.constant 0 : index
      %47 = vector.load %arg8[%45, %46, %c0_19] : memref<2x64x32xbf16, #tpu.memory_space<vmem>>, vector<1x64x32xbf16>
      %48 = vector.shape_cast %47 : vector<1x64x32xbf16> to vector<64x32xbf16>
      %49 = vector.shape_cast %44 : vector<64x32xbf16> to vector<1x64x32xbf16>
      tpu.vector_store %arg8[%45, %46, %c0_19], %49 {strides = array<i32>} : memref<2x64x32xbf16, #tpu.memory_space<vmem>>, vector<1x64x32xbf16>,
      %50 = arith.index_cast %2 : i32 to index
      %c0_20 = arith.constant 0 : index
      %51 = vector.load %arg7[%50, %c0_20] : memref<64x128xf32, #tpu.memory_space<vmem>>, vector<64x128xf32>
      %c0_21 = arith.constant 0 : index
      %c0_22 = arith.constant 0 : index
      %c0_23 = arith.constant 0 : index
      %52 = vector.load %arg5[%c0_21, %c0_22, %c0_23] : memref<1x32x128xf32, #tpu.memory_space<vmem>>, vector<1x32x128xf32>
      %53 = vector.shape_cast %52 : vector<1x32x128xf32> to vector<32x128xf32>
      %cst_24 = arith.constant dense<0.000000e+00> : vector<64x128xf32>
      %54 = tpu.matmul %43, %53, %cst_24 {dimension_numbers = #tpu.dot_dimension_numbers<[1], [0], [0], [1], [0, 0, 1, 1], [], []>} : vector<64x32xf32>, vector<32x128xf32>, vector<64x128xf32> -> vector<64x128xf32>
      %55 = arith.addf %51, %54 : vector<64x128xf32>
      %56 = arith.index_cast %2 : i32 to index
      %c0_25 = arith.constant 0 : index
      %57 = vector.load %arg7[%56, %c0_25] : memref<64x128xf32, #tpu.memory_space<vmem>>, vector<64x128xf32>
      tpu.vector_store %arg7[%56, %c0_25], %55 {strides = array<i32>} : memref<64x128xf32, #tpu.memory_space<vmem>>, vector<64x128xf32>,
    } else {
    }
    return
  }
  func.func @transform_0(%arg0: i32, %arg1: i32) -> (i32, i32) {
    %c0_i32 = arith.constant 0 : i32
    %c0_i32_0 = arith.constant 0 : i32
    %c0_i32_1 = arith.constant 0 : i32
    return %c0_i32, %c0_i32_0 : i32, i32
  }
  func.func @transform_1(%arg0: i32, %arg1: i32) -> (i32, i32) {
    %c0_i32 = arith.constant 0 : i32
    %c0_i32_0 = arith.constant 0 : i32
    %c0_i32_1 = arith.constant 0 : i32
    return %c0_i32, %c0_i32_0 : i32, i32
  }
  func.func @transform_2(%arg0: i32, %arg1: i32) -> (i32, i32) {
    %c0_i32 = arith.constant 0 : i32
    %c0_i32_0 = arith.constant 0 : i32
    %c0_i32_1 = arith.constant 0 : i32
    return %c0_i32, %c0_i32_0 : i32, i32
  }
  func.func @transform_3(%arg0: i32, %arg1: i32) -> (i32, i32, i32) {
    %c0_i32 = arith.constant 0 : i32
    %c0_i32_0 = arith.constant 0 : i32
    %c0_i32_1 = arith.constant 0 : i32
    return %arg0, %c0_i32, %c0_i32_0 : i32, i32, i32
  }
  func.func @transform_4(%arg0: i32, %arg1: i32) -> (i32, i32) {
    %c0_i32 = arith.constant 0 : i32
    %c0_i32_0 = arith.constant 0 : i32
    %c0_i32_1 = arith.constant 0 : i32
    return %c0_i32, %c0_i32_0 : i32, i32
  }
  func.func @transform_5(%arg0: i32, %arg1: i32) -> (i32, i32) {
    %c0_i32 = arith.constant 0 : i32
    %c0_i32_0 = arith.constant 0 : i32
    %c0_i32_1 = arith.constant 0 : i32
    return %c0_i32, %c0_i32_0 : i32, i32
  }
}

</mosaic_0001>

<bundles_post_ra>
// kernel: cheb_conv.1
= control target key start
LH: loop header
LB: loop body
LE: loop exit
PB: predicated region body
PF: predicated region fallthrough
CT: control target
= control target key end

     0   :  { %s1099_s18 = smov 0   ;;  %s1101_s19 = smov 0   ;;  %s1433_s0 = inlined_call_operand.vmem [shape: f32[64,32], index: 0, kind: input, shape index: {}]   ;;  %s1434_s1 = inlined_call_operand.vmem [shape: bf16[64,64], index: 1, kind: input, shape index: {}]   ;;  %s1435_s2 = inlined_call_operand.vmem [shape: f32[32,128], index: 2, kind: input, shape index: {}]   ;;  %s1436_s3 = inlined_call_operand.vmem [shape: f32[2,32,128], index: 3, kind: input, shape index: {}]   ;;  %s1437_s4 = inlined_call_operand.vmem [shape: f32[1,128], index: 4, kind: input, shape index: {}]   ;;  %s1438_s5 = inlined_call_operand.vmem [shape: f32[64,128], index: 5, kind: output, shape index: {}]  }
   0x1   :  { %s1103_s20 = smov 0  }
   0x2 LB: > { %s27_s21 = sadd.s32 1, %s1063_s19  ;;  %p861_p0 = scmp.ge.s32.totalorder %s1067_s20, 1  ;;  %s1067_s20 = sphi %s1103_s20, %s15_s20   ;;  %s1063_s19 = sphi %s1101_s19, %s1440_s19   ;;  %s1059_s18 = sphi %s1099_s18, %s1439_s18  }
   0x3   : > { %p29_p1 = scmp.ge.s32.totalorder %s27_s21, 2  ;;  %p194_p2 = scmp.lt.s32.totalorder %s1067_s20, 3 }
   0x5   : > { %s1442_s21 = smov (%p29_p1, %s27_s21), 0  ;;  %p195_p3 = pnand %p861_p0, %p194_p2 }
   0x6   : > { %p217_p4 = scmp.lt.s32.totalorder (!%p195_p3), %s1059_s18, 1  ;;  %s1121_s22 = sadd.s32 (!%p195_p3), 1, %s1059_s18 }
   0x7   : > { %198 = sbr.rel (%p195_p3) target bundleno = 679 (0x2a7), region = 40  ;;  %p864_p5 = scmp.ne.s32.totalorder (!%p195_p3), %s1121_s22, 1 }
   0xc   : > { %v1126_v0 = vld [vmem:[%s1434_s1] sm:$0xf]  ;;  %v1134_v2 = vld [vmem:[%s1434_s1] sm:$0xf0]  ;;  %v1142_v4 = vld [vmem:[%s1434_s1 + $0x8] sm:$0xf] }
   0xd   : > { %v867_v1 = vld [vmem:[%s1434_s1] sm:$0xf]  ;;  %v968_v3 = vld [vmem:[%s1434_s1] sm:$0xf0]  ;;  %s218_s8 = scalar_select %p217_p4, %s1059_s18, 1 }
   0xe   : > { %v871_v5 = vld [vmem:[%s1434_s1 + $0x8] sm:$0xf]  ;;  %v1151_v6 = vld [vmem:[%s1434_s1 + $0x8] sm:$0xf0]  ;;  %v1159_v8 = vld [vmem:[%s1434_s1 + $0x10] sm:$0xf] }
   0xf   : > { %v970_v7 = vld [vmem:[%s1434_s1 + $0x8] sm:$0xf0]  ;;  %v1164_v9 = vld [vmem:[%s1434_s1 + $0x10] sm:$0xf]  ;;  %s966_s24 = sshll.u32 %s218_s8, 5  ;;  %240 = sbr.rel (%p864_p5) target bundleno = 355 (0x163), region = 44 }
  0x10   : > { %v1169_v10 = vld [vmem:[%s1434_s1 + $0x10] sm:$0xf0]  ;;  %s1177_s6 = scalar_lea.vmem %s1436_s3, %s966_s24  ;;  %v1182_v12 = vld [vmem:[%s1434_s1 + $0x18] sm:$0xf]  ;;  %v1192_v14 = vld [vmem:[%s1434_s1 + $0x18] sm:$0xf0] }
  0x11   : > { %v972_v11 = vld [vmem:[%s1434_s1 + $0x10] sm:$0xf0]  ;;  %v1187_v13 = vld [vmem:[%s1434_s1 + $0x18] sm:$0xf]  ;;  %v974_v15 = vld [vmem:[%s1434_s1 + $0x18] sm:$0xf0] }
  0x14   : > { %v1201_v16 = vld [vmem:[%s1433_s0 + $0x30] sm:$0xff]  ;;  %v1206_v17 = vld [vmem:[%s1433_s0 + $0x38] sm:$0xff]  ;;  %v1211_v18 = vld [vmem:[%s1433_s0 + $0x20] sm:$0xff]  ;;  %v868_v28 = vor.u32 %v968_v3, %v867_v1  ;;  %v872_v29 = vor.u32 %v970_v7, %v871_v5  ;;  %vm282_vm0 = vcmask 523264   ;;  %vm334_vm1 = vcmask 257024  }
  0x15   : > { %v261_v19 = vpack.c.bf16 %v1206_v17, %v1201_v16  ;;  %v1218_v20 = vld [vmem:[%s1433_s0 + $0x28] sm:$0xff]  ;;  %v252_v22 = vld [vmem:[%s1433_s0 + $0x10] sm:$0xff]  ;;  %v253_v23 = vld [vmem:[%s1433_s0 + $0x18] sm:$0xff]  ;;  %vm367_vm2 = vcmask 261120   ;;  %v876_v38 = vor.u32 %v972_v11, %v1164_v9  ;;  %v880_v39 = vor.u32 %v974_v15, %v1187_v13 }
  0x16   : > { %v260_v21 = vpack.c.bf16 %v1218_v20, %v1211_v18  ;;  %v259_v24 = vpack.c.bf16 %v253_v23, %v252_v22  ;;  %v250_v25 = vld [vmem:[%s1433_s0] sm:$0xff]  ;;  %v251_v26 = vld [vmem:[%s1433_s0 + $0x8] sm:$0xff]  ;;  %v366_v30 = vld [vmem:[%s1435_s2 + $0x18] sm:$0xff]  ;;  %v326_v42 = vpack.c.bf16 %v252_v22, %v252_v22  ;;  %v327_v43 = vpack.c.bf16 %v253_v23, %v253_v23 }
  0x17   : > { %299 = vmatpush.bf16.msra.mxu0 %v261_v19  ;;  %1000 = vmatpush.bf16.msra.mxu3 %v261_v19  ;;  %v258_v27 = vpack.c.bf16 %v251_v26, %v250_v25  ;;  %v365_v31 = vld [vmem:[%s1435_s2 + $0x10] sm:$0xff]  ;;  %v324_v32 = vpack.c.bf16 %v250_v25, %v250_v25  ;;  %v447_v33 = vld [vmem:[%s1177_s6 + $0x18] sm:$0xff]  ;;  %v364_v34 = vld [vmem:[%s1435_s2 + $0x8] sm:$0xff]  ;;  %v325_v41 = vpack.c.bf16 %v251_v26, %v251_v26 }
  0x18   : > { %1004 = vmatpush.msra.mxu1 %v366_v30  ;;  %1008 = vmatpush.msra.mxu2 %v447_v33  ;;  %v446_v35 = vld [vmem:[%s1177_s6 + $0x10] sm:$0xff]  ;;  %v363_v36 = vld [vmem:[%s1435_s2] sm:$0xff]  ;;  %v445_v37 = vld [vmem:[%s1177_s6 + $0x8] sm:$0xff]  ;;  %337 = vst.msk [vmem:[#allocation2 + $0x8] sm:$0xf] %vm334_vm1, %v326_v42  ;;  %v328_v46 = vpack.c.bf16 %v1211_v18, %v1211_v18  ;;  %v329_v51 = vpack.c.bf16 %v1218_v20, %v1218_v20 }
  0x19   : > { %335 = vst.msk [vmem:[#allocation2] sm:$0xf] %vm334_vm1, %v324_v32  ;;  %v444_v40 = vld [vmem:[%s1177_s6] sm:$0xff]  ;;  %v330_v54 = vpack.c.bf16 %v1201_v16, %v1201_v16  ;;  %v331_v57 = vpack.c.bf16 %v1206_v17, %v1206_v17 }
  0x1a   : > { %1005 = vmatpush.msra.mxu1 %v365_v31  ;;  %1009 = vmatpush.msra.mxu2 %v446_v35  ;;  %336 = vst.msk [vmem:[#allocation2 + $0x4] sm:$0xf] %vm334_vm1, %v325_v41  ;;  %v1044_v3 = vld [vmem:[%s1437_s4] ss:$0 sm:$0xff] }
  0x1b   : > { %300 = vmatpush.bf16.msra.mxu0 %v260_v21  ;;  %1001 = vmatpush.bf16.msra.mxu3 %v260_v21  ;;  %338 = vst.msk [vmem:[#allocation2 + $0xc] sm:$0xf] %vm334_vm1, %v327_v43 }
  0x1c   : > { %1006 = vmatpush.msra.mxu1 %v364_v34  ;;  %1010 = vmatpush.msra.mxu2 %v445_v37  ;;  %339 = vst.msk [vmem:[#allocation2 + $0x10] sm:$0xf] %vm334_vm1, %v328_v46 }
  0x1d   : > { %340 = vst.msk [vmem:[#allocation2 + $0x14] sm:$0xf] %vm334_vm1, %v329_v51 }
  0x1e   : > { %1007 = vmatpush.msra.mxu1 %v363_v36  ;;  %1011 = vmatpush.msra.mxu2 %v444_v40  ;;  %341 = vst.msk [vmem:[#allocation2 + $0x18] sm:$0xf] %vm334_vm1, %v330_v54 }
  0x1f   : > { %301 = vmatpush.bf16.msra.mxu0 %v259_v24  ;;  %1002 = vmatpush.bf16.msra.mxu3 %v259_v24  ;;  %342 = vst.msk [vmem:[#allocation2 + $0x1c] sm:$0xf] %vm334_vm1, %v331_v57 }
  0x20   : > { %894 = vmatmul.msk.f32.vlgmr.msra.gmra.mxu1 %vm367_vm2, %v251_v26 }
  0x23   : > { %302 = vmatpush.bf16.msra.mxu0 %v258_v27  ;;  %1003 = vmatpush.bf16.msra.mxu3 %v258_v27 }
  0x26   : > { %881 = vmatmul.msk.bf16.vlgmr.msra.gmra.mxu0 %vm282_vm0, %v868_v28  ;;  %882 = vmatmul.msk.bf16.vlgmr.msra.gmra.mxu3 %vm282_vm0, %v872_v29 }
  0x27   : > { %404 = vmatpush.msrb.mxu0 %v366_v30 }
  0x28   : > { %895 = vmatmul.msk.f32.gmra.mxu1 %vm367_vm2, %v252_v22 }
  0x29   : > { %405 = vmatpush.msrb.mxu0 %v365_v31 }
  0x2b   : > { %406 = vmatpush.msrb.mxu0 %v364_v34 }
  0x2d   : > { %407 = vmatpush.msrb.mxu0 %v363_v36 }
  0x2f   : > { %484 = vmatpush.msra.mxu0 %v447_v33 }
  0x30   : > { %896 = vmatmul.msk.f32.gmra.mxu1 %vm367_vm2, %v253_v23 }
  0x31   : > { %485 = vmatpush.msra.mxu0 %v446_v35 }
  0x33   : > { %486 = vmatpush.msra.mxu0 %v445_v37 }
  0x35   : > { %487 = vmatpush.msra.mxu0 %v444_v40 }
  0x36   : > { %883 = vmatmul.msk.bf16.gmra.mxu3 %vm282_vm0, %v876_v38  ;;  %893 = vmatmul.msk.f32.vlgmr.msrb.gmra.mxu0 %vm367_vm2, %v250_v25 }
  0x38   : > { %897 = vmatmul.msk.f32.gmra.mxu1 %vm367_vm2, %v1211_v18 }
  0x40   : > { %898 = vmatmul.msk.f32.gmra.mxu1 %vm367_vm2, %v1218_v20 }
  0x46   : > { %884 = vmatmul.msk.bf16.gmra.mxu3 %vm282_vm0, %v880_v39 }
  0x48   : > { %899 = vmatmul.msk.f32.gmra.mxu1 %vm367_vm2, %v1201_v16 }
  0x50   : > { %900 = vmatmul.msk.f32.gmra.mxu1 %vm367_vm2, %v1206_v17 }
  0x9d   : > { %v412_v5 = vpop.f32.mrf.mxu1 }
  0x9e   : > { %v437_v15 = vadd.f32 %v1044_v3, %v412_v5 }
  0xa3   : > { %v304_v44 = vpop.f32.mrf.mxu0 }
  0xa4   : > { %v343_v45 = vpack.c.bf16 %v304_v44, %v304_v44  ;;  %901 = vmatmul.msk.f32.vlgmr.msra.gmra.mxu0 %vm367_vm2, %v304_v44 }
  0xa5   : > { %v415_v13 = vpop.f32.mrf.mxu1 }
  0xa6   : > { %885 = vst.msk [vmem:[#allocation2 + $0x20] sm:$0xf] %vm334_vm1, %v343_v45  ;;  %v438_v19 = vadd.f32 %v1044_v3, %v415_v13 }
  0xa9   : > { %v309_v47 = vpop.f32.mrf.mxu3 }
  0xaa   : > { %v345_v48 = vpack.c.bf16 %v309_v47, %v309_v47 }
  0xab   : > { %v306_v49 = vpop.f32.mrf.mxu0 }
  0xac   : > { %v344_v50 = vpack.c.bf16 %v306_v49, %v306_v49  ;;  %887 = vst.msk [vmem:[#allocation2 + $0x28] sm:$0xf] %vm334_vm1, %v345_v48  ;;  %902 = vmatmul.msk.f32.vlgmr.msra.gmra.mxu2 %vm367_vm2, %v306_v49 }
  0xad   : > { %v418_v18 = vpop.f32.mrf.mxu1 }
  0xae   : > { %886 = vst.msk [vmem:[#allocation2 + $0x24] sm:$0xf] %vm334_vm1, %v344_v50  ;;  %v439_v23 = vadd.f32 %v1044_v3, %v418_v18 }
  0xb1   : > { %v311_v52 = vpop.f32.mrf.mxu3 }
  0xb2   : > { %v346_v53 = vpack.c.bf16 %v311_v52, %v311_v52 }
  0xb3   : > { %v409_v1 = vpop.f32.mrf.mxu0 }
  0xb4   : > { %888 = vst.msk [vmem:[#allocation2 + $0x2c] sm:$0xf] %vm334_vm1, %v346_v53  ;;  %903 = vmatmul.msk.f32.gmra.mxu2 %vm367_vm2, %v309_v47  ;;  %v436_v7 = vadd.f32 %v1044_v3, %v409_v1 }
  0xb5   : > { %v421_v22 = vpop.f32.mrf.mxu1 }
  0xb6   : > { %v440_v26 = vadd.f32 %v1044_v3, %v421_v22 }
  0xb9   : > { %v314_v55 = vpop.f32.mrf.mxu3 }
  0xba   : > { %v347_v56 = vpack.c.bf16 %v314_v55, %v314_v55 }
  0xbc   : > { %889 = vst.msk [vmem:[#allocation2 + $0x30] sm:$0xf] %vm334_vm1, %v347_v56  ;;  %904 = vmatmul.msk.f32.gmra.mxu2 %vm367_vm2, %v311_v52 }
  0xbd   : > { %v424_v27 = vpop.f32.mrf.mxu1 }
  0xbe   : > { %v441_v30 = vadd.f32 %v1044_v3, %v424_v27 }
  0xc1   : > { %v316_v58 = vpop.f32.mrf.mxu3 }
  0xc2   : > { %v348_v59 = vpack.c.bf16 %v316_v58, %v316_v58 }
  0xc4   : > { %890 = vst.msk [vmem:[#allocation2 + $0x34] sm:$0xf] %vm334_vm1, %v348_v59  ;;  %905 = vmatmul.msk.f32.gmra.mxu2 %vm367_vm2, %v314_v55 }
  0xc5   : > { %v427_v32 = vpop.f32.mrf.mxu1 }
  0xc6   : > { %v442_v34 = vadd.f32 %v1044_v3, %v427_v32 }
  0xc9   : > { %v319_v60 = vpop.f32.mrf.mxu3 }
  0xca   : > { %v349_v61 = vpack.c.bf16 %v319_v60, %v319_v60 }
  0xcc   : > { %891 = vst.msk [vmem:[#allocation2 + $0x38] sm:$0xf] %vm334_vm1, %v349_v61  ;;  %906 = vmatmul.msk.f32.gmra.mxu2 %vm367_vm2, %v316_v58 }
  0xcd   : > { %v430_v37 = vpop.f32.mrf.mxu1 }
  0xce   : > { %v443_v38 = vadd.f32 %v1044_v3, %v430_v37 }
  0xd1   : > { %v321_v62 = vpop.f32.mrf.mxu3 }
  0xd2   : > { %v350_v63 = vpack.c.bf16 %v321_v62, %v321_v62 }
  0xd4   : > { %892 = vst.msk [vmem:[#allocation2 + $0x3c] sm:$0xf] %vm334_vm1, %v350_v63  ;;  %907 = vmatmul.msk.f32.gmra.mxu2 %vm367_vm2, %v319_v60 }
  0xdc   : > { %908 = vmatmul.msk.f32.gmra.mxu2 %vm367_vm2, %v321_v62 }
 0x121   : > { %v489_v9 = vpop.f32.mrf.mxu0 }
 0x122   : > { %v513_v11 = vadd.f32 %v489_v9, %v436_v7 }
 0x124   : > { %522 = vst [vmem:[%s1438_s5] sm:$0xff] %v513_v11 }
 0x12f   : > { %v492_v16 = vpop.f32.mrf.mxu2 }
 0x130   : > { %v514_v17 = vadd.f32 %v492_v16, %v437_v15 }
 0x132   : > { %523 = vst [vmem:[%s1438_s5 + $0x8] sm:$0xff] %v514_v17 }
 0x137   : > { %v495_v20 = vpop.f32.mrf.mxu2 }
 0x138   : > { %v515_v21 = vadd.f32 %v495_v20, %v438_v19 }
 0x13a   : > { %524 = vst [vmem:[%s1438_s5 + $0x10] sm:$0xff] %v515_v21 }
 0x13f   : > { %v498_v24 = vpop.f32.mrf.mxu2 }
 0x140   : > { %v516_v25 = vadd.f32 %v498_v24, %v439_v23 }
 0x142   : > { %525 = vst [vmem:[%s1438_s5 + $0x18] sm:$0xff] %v516_v25 }
 0x147   : > { %v501_v28 = vpop.f32.mrf.mxu2 }
 0x148   : > { %v517_v29 = vadd.f32 %v501_v28, %v440_v26 }
 0x14a   : > { %526 = vst [vmem:[%s1438_s5 + $0x20] sm:$0xff] %v517_v29 }
 0x14f   : > { %v504_v31 = vpop.f32.mrf.mxu2 }
 0x150   : > { %v518_v33 = vadd.f32 %v504_v31, %v441_v30 }
 0x152   : > { %527 = vst [vmem:[%s1438_s5 + $0x28] sm:$0xff] %v518_v33 }
 0x157   : > { %v507_v35 = vpop.f32.mrf.mxu2 }
 0x158   : > { %v519_v36 = vadd.f32 %v507_v35, %v442_v34 }
 0x15a   : > { %528 = vst [vmem:[%s1438_s5 + $0x30] sm:$0xff] %v519_v36 }
 0x15f   : > { %v510_v39 = vpop.f32.mrf.mxu2 }
 0x160   : > { %v520_v40 = vadd.f32 %v510_v39, %v443_v38 }
 0x162   : > { %529 = vst [vmem:[%s1438_s5 + $0x38] sm:$0xff] %v520_v40 }
 0x163 PF: > { %p909_p6 = scmp.lt.s32.totalorder %s1121_s22, 2 }
 0x164   : > { %p534_p7 = scmp.lt.s32.totalorder (!%p909_p6), %s1059_s18, 0  ;;  %s535_s24 = ssub.s32 (!%p909_p6), 0, %s1059_s18 }
 0x165   : > { %533 = sbr.rel (%p909_p6) target bundleno = 679 (0x2a7), region = 48  ;;  %s910_s25 = smin.u32 (!%p909_p6), %s1059_s18, %s535_s24 }
 0x166   : > { %s537_s26 = sand.u32 (!%p909_p6), 1, %s910_s25   ;;  %s547_s18 = ssub.s32 (!%p909_p6), 0, %s1121_s22 }
 0x167   : > { %s538_s27 = ssub.s32 (!%p909_p6), 0, %s537_s26  ;;  %s913_s7 = smin.u32 (!%p909_p6), %s547_s18, %s1121_s22 }
 0x168   : > { %s549_s9 = sand.u32 (!%p909_p6), 1, %s913_s7   ;;  %p546_p9 = scmp.lt.s32.totalorder (!%p909_p6), %s1121_s22, 0 }
 0x169   : > { %s550_s8 = ssub.s32 (!%p909_p6), 0, %s549_s9 }
 0x16a   : > { %s1444_s27 = smov (!%p534_p7, %s538_s27), %s537_s26  ;;  %v720_v42 = vld [vmem:[%s1177_s6 + $0x18] sm:$0xff]  ;;  %v921_v46 = vor.u32 %v1134_v2, %v1126_v0  ;;  %v929_v47 = vor.u32 %v1169_v10, %v1159_v8  ;;  %vm613_vm3 = vcmask 523264   ;;  %v925_v48 = vor.u32 %v1151_v6, %v1142_v4  ;;  %v719_v0 = vld [vmem:[%s1177_s6 + $0x10] sm:$0xff]  ;;  %v718_v2 = vld [vmem:[%s1177_s6 + $0x8] sm:$0xff]  ;;  %s1448_s8 = smov (!%p546_p9, %s550_s8), %s549_s9 }
 0x16b   : > { %p912_p8 = scmp.lt.s32.totalorder %s1444_s27, 0  ;;  %s544_s28 = sadd.s32 2, %s1444_s27  ;;  %758 = vmatpush.msra.mxu1 %v720_v42  ;;  %1016 = vmatpush.msra.mxu3 %v720_v42  ;;  %v933_v49 = vor.u32 %v1192_v14, %v1182_v12  ;;  %v717_v8 = vld [vmem:[%s1177_s6] sm:$0xff]  ;;  %vm721_vm4 = vcmask 261120   ;;  %vm699_vm5 = vcmask 257024   ;;  %v710_v36 = vld [vmem:[%s1438_s5 + $0x8] sm:$0xff] }
 0x16c   : > { %p915_p10 = scmp.lt.s32.totalorder %s1448_s8, 0  ;;  %s556_s10 = sadd.s32 2, %s1448_s8  ;;  %v709_v33 = vld [vmem:[%s1438_s5] sm:$0xff]  ;;  %v711_v39 = vld [vmem:[%s1438_s5 + $0x10] sm:$0xff]  ;;  %v714_v42 = vld [vmem:[%s1438_s5 + $0x28] sm:$0xff] }
 0x16d   : > { %s1446_s28 = smov (!%p912_p8, %s544_s28), %s1444_s27  ;;  %759 = vmatpush.msra.mxu1 %v719_v0  ;;  %1017 = vmatpush.msra.mxu3 %v719_v0 }
 0x16e   : > { %s975_s29 = sshll.u32 %s1446_s28, 5  ;;  %s1450_s10 = smov (!%p915_p10, %s556_s10), %s1448_s8 }
 0x16f   : > { %s560_s30 = scalar_lea.vmem [#allocation2], %s975_s29  ;;  %760 = vmatpush.msra.mxu1 %v718_v2  ;;  %1018 = vmatpush.msra.mxu3 %v718_v2  ;;  %s980_s11 = sshll.u32 %s1450_s10, 5  ;;  %v713_v2 = vld [vmem:[%s1438_s5 + $0x20] sm:$0xff] }
 0x170   : > { %v979_v41 = vld [vmem:[%s560_s30 + $0x18] sm:$0xff]  ;;  %v978_v43 = vld [vmem:[%s560_s30 + $0x10] sm:$0xff]  ;;  %v977_v44 = vld [vmem:[%s560_s30 + $0x8] sm:$0xff]  ;;  %s1346_s12 = scalar_lea.vmem [#allocation2], %s980_s11 }
 0x171   : > { %630 = vmatpush.bf16.msra.mxu0 %v979_v41  ;;  %1012 = vmatpush.bf16.msra.mxu2 %v979_v41  ;;  %v976_v45 = vld [vmem:[%s560_s30] sm:$0xff]  ;;  %v998_v14 = vld [vmem:[%s1346_s12 + $0x10] sm:$0xff]   ;;  %v997_v61 = vld [vmem:[%s1346_s12 + $0x8] sm:$0xff]  }
 0x172   : > { %761 = vmatpush.msra.mxu1 %v717_v8  ;;  %1019 = vmatpush.msra.mxu3 %v717_v8  ;;  %v982_v4 = vld [vmem:[%s1346_s12] sm:$0xff]   ;;  %v991_v52 = vunpack.c.l.bf16 %v998_v14  ;;  %v992_v63 = vunpack.c.h.bf16 %v998_v14  ;;  %v987_v5 = vunpack.c.l.bf16 %v997_v61  ;;  %v999_v13 = vld [vmem:[%s1346_s12 + $0x18] sm:$0xff]   ;;  %v988_v21 = vunpack.c.h.bf16 %v997_v61 }
 0x173   : > { %v983_v6 = vunpack.c.l.bf16 %v982_v4  ;;  %v984_v55 = vunpack.c.h.bf16 %v982_v4  ;;  %v995_v18 = vunpack.c.l.bf16 %v999_v13  ;;  %v996_v28 = vunpack.c.h.bf16 %v999_v13 }
 0x175   : > { %631 = vmatpush.bf16.msra.mxu0 %v978_v43  ;;  %1013 = vmatpush.bf16.msra.mxu2 %v978_v43 }
 0x179   : > { %632 = vmatpush.bf16.msra.mxu0 %v977_v44  ;;  %1014 = vmatpush.bf16.msra.mxu2 %v977_v44 }
 0x17d   : > { %633 = vmatpush.bf16.msra.mxu0 %v976_v45  ;;  %1015 = vmatpush.bf16.msra.mxu2 %v976_v45  ;;  %v712_v45 = vld [vmem:[%s1438_s5 + $0x18] sm:$0xff] }
 0x180   : > { %950 = vmatmul.msk.bf16.vlgmr.msra.gmra.mxu0 %vm613_vm3, %v921_v46  ;;  %952 = vmatmul.msk.bf16.vlgmr.msra.gmra.mxu2 %vm613_vm3, %v929_v47 }
 0x190   : > { %951 = vmatmul.msk.bf16.gmra.mxu0 %vm613_vm3, %v925_v48  ;;  %953 = vmatmul.msk.bf16.gmra.mxu2 %vm613_vm3, %v933_v49  ;;  %v715_v48 = vld [vmem:[%s1438_s5 + $0x30] sm:$0xff] }
 0x1fd   : > { %v635_v10 = vpop.f32.mrf.mxu0 }
 0x1fe   : > { %v655_v12 = vmul.f32 2.0, %v635_v10 }
 0x200   : > { %v683_v50 = vsub.f32 %v655_v12, %v983_v6  ;;  %v716_v6 = vld [vmem:[%s1438_s5 + $0x38] sm:$0xff] }
 0x202   : > { %v691_v51 = vpack.c.bf16 %v683_v50, %v683_v50  ;;  %956 = vmatmul.msk.f32.vlgmr.msra.gmra.mxu1 %vm721_vm4, %v683_v50 }
 0x203   : > { %v645_v53 = vpop.f32.mrf.mxu2 }
 0x204   : > { %700 = vst.msk [vmem:[%s1346_s12] sm:$0xf] %vm699_vm5, %v691_v51  ;;  %v659_v54 = vmul.f32 2.0, %v645_v53 }
 0x205   : > { %v637_v56 = vpop.f32.mrf.mxu0 }
 0x206   : > { %v687_v57 = vsub.f32 %v659_v54, %v991_v52  ;;  %v656_v58 = vmul.f32 2.0, %v637_v56 }
 0x208   : > { %v695_v59 = vpack.c.bf16 %v687_v57, %v687_v57  ;;  %v684_v60 = vsub.f32 %v656_v58, %v984_v55 }
 0x20a   : > { %704 = vst.msk [vmem:[%s1346_s12 + $0x10] sm:$0xf] %vm699_vm5, %v695_v59  ;;  %v692_v62 = vpack.c.bf16 %v684_v60, %v684_v60  ;;  %957 = vmatmul.msk.f32.gmra.mxu1 %vm721_vm4, %v684_v60 }
 0x20b   : > { %v647_v1 = vpop.f32.mrf.mxu2 }
 0x20c   : > { %701 = vst.msk [vmem:[%s1346_s12 + $0x4] sm:$0xf] %vm699_vm5, %v692_v62  ;;  %v660_v3 = vmul.f32 2.0, %v647_v1 }
 0x20d   : > { %v640_v7 = vpop.f32.mrf.mxu0 }
 0x20e   : > { %v688_v9 = vsub.f32 %v660_v3, %v992_v63  ;;  %v657_v11 = vmul.f32 2.0, %v640_v7 }
 0x210   : > { %v696_v15 = vpack.c.bf16 %v688_v9, %v688_v9  ;;  %v685_v16 = vsub.f32 %v657_v11, %v987_v5  ;;  %961 = vmatmul.msk.f32.vlgmr.msra.gmra.mxu3 %vm721_vm4, %v688_v9 }
 0x212   : > { %705 = vst.msk [vmem:[%s1346_s12 + $0x14] sm:$0xf] %vm699_vm5, %v696_v15  ;;  %v693_v17 = vpack.c.bf16 %v685_v16, %v685_v16  ;;  %958 = vmatmul.msk.f32.gmra.mxu1 %vm721_vm4, %v685_v16 }
 0x213   : > { %v650_v19 = vpop.f32.mrf.mxu2 }
 0x214   : > { %702 = vst.msk [vmem:[%s1346_s12 + $0x8] sm:$0xf] %vm699_vm5, %v693_v17  ;;  %v661_v20 = vmul.f32 2.0, %v650_v19 }
 0x215   : > { %v642_v22 = vpop.f32.mrf.mxu0 }
 0x216   : > { %v689_v23 = vsub.f32 %v661_v20, %v995_v18  ;;  %v658_v24 = vmul.f32 2.0, %v642_v22 }
 0x218   : > { %v697_v25 = vpack.c.bf16 %v689_v23, %v689_v23  ;;  %v686_v26 = vsub.f32 %v658_v24, %v988_v21  ;;  %962 = vmatmul.msk.f32.gmra.mxu3 %vm721_vm4, %v689_v23 }
 0x21a   : > { %706 = vst.msk [vmem:[%s1346_s12 + $0x18] sm:$0xf] %vm699_vm5, %v697_v25  ;;  %v694_v27 = vpack.c.bf16 %v686_v26, %v686_v26  ;;  %959 = vmatmul.msk.f32.gmra.mxu1 %vm721_vm4, %v686_v26 }
 0x21b   : > { %v652_v29 = vpop.f32.mrf.mxu2 }
 0x21c   : > { %703 = vst.msk [vmem:[%s1346_s12 + $0xc] sm:$0xf] %vm699_vm5, %v694_v27  ;;  %v662_v30 = vmul.f32 2.0, %v652_v29 }
 0x21e   : > { %v690_v31 = vsub.f32 %v662_v30, %v996_v28 }
 0x220   : > { %v698_v32 = vpack.c.bf16 %v690_v31, %v690_v31  ;;  %963 = vmatmul.msk.f32.gmra.mxu3 %vm721_vm4, %v690_v31 }
 0x222   : > { %707 = vst.msk [vmem:[%s1346_s12 + $0x1c] sm:$0xf] %vm699_vm5, %v698_v32  ;;  %960 = vmatmul.msk.f32.gmra.mxu1 %vm721_vm4, %v687_v57 }
 0x27f   : > { %v763_v34 = vpop.f32.mrf.mxu1 }
 0x280   : > { %v787_v35 = vadd.f32 %v763_v34, %v709_v33 }
 0x282   : > { %795 = vst [vmem:[%s1438_s5] sm:$0xff] %v787_v35 }
 0x287   : > { %v766_v37 = vpop.f32.mrf.mxu1 }
 0x288   : > { %v788_v38 = vadd.f32 %v766_v37, %v710_v36 }
 0x28a   : > { %796 = vst [vmem:[%s1438_s5 + $0x8] sm:$0xff] %v788_v38 }
 0x28f   : > { %v769_v40 = vpop.f32.mrf.mxu1 }
 0x290   : > { %v789_v41 = vadd.f32 %v769_v40, %v711_v39 }
 0x292   : > { %797 = vst [vmem:[%s1438_s5 + $0x10] sm:$0xff] %v789_v41 }
 0x293   : > { %v778_v43 = vpop.f32.mrf.mxu3 }
 0x294   : > { %v792_v44 = vadd.f32 %v778_v43, %v714_v42 }
 0x296   : > { %800 = vst [vmem:[%s1438_s5 + $0x28] sm:$0xff] %v792_v44 }
 0x297   : > { %v772_v46 = vpop.f32.mrf.mxu1 }
 0x298   : > { %v790_v47 = vadd.f32 %v772_v46, %v712_v45 }
 0x29a   : > { %798 = vst [vmem:[%s1438_s5 + $0x18] sm:$0xff] %v790_v47 }
 0x29b   : > { %v781_v49 = vpop.f32.mrf.mxu3 }
 0x29c   : > { %v793_v0 = vadd.f32 %v781_v49, %v715_v48 }
 0x29e   : > { %801 = vst [vmem:[%s1438_s5 + $0x30] sm:$0xff] %v793_v0 }
 0x29f   : > { %v775_v8 = vpop.f32.mrf.mxu1 }
 0x2a0   : > { %v791_v4 = vadd.f32 %v775_v8, %v713_v2 }
 0x2a2   : > { %799 = vst [vmem:[%s1438_s5 + $0x20] sm:$0xff] %v791_v4 }
 0x2a3   : > { %v784_v10 = vpop.f32.mrf.mxu3 }
 0x2a4   : > { %v794_v12 = vadd.f32 %v784_v10, %v716_v6 }
 0x2a6   : > { %802 = vst [vmem:[%s1438_s5 + $0x38] sm:$0xff] %v794_v12 }
 0x2a7 PF: > { %s15_s20 = sadd.s32 1, %s1067_s20   ;;  %s1439_s18 = smov %s1063_s19 }
 0x2a8   : > { %p12_p11 = scmp.ge.s32.totalorder %s15_s20, 4   ;;  %s1440_s19 = smov %s1442_s21 }
 0x2aa   :  { %14 = sbr.rel (!%p12_p11) target bundleno = 2 (0x2), region = 82 }

</bundles_post_ra>
